<compile_context>
chip_gen: v7x
topology: tpu7x:2x2x1
jax: 0.10.0
libtpu: 0.0.40
codegen_flags: <defaults>
</compile_context>

<pallas_src>
import jax
import jax.numpy as jnp
from jax.experimental import pallas as pl
from jax.experimental.pallas import tpu as pltpu


# ---------------------------------------------------------------------------
# Tiling helper: largest multiple-of-8 tile <= cap that divides m, else full m
# (full-extent blocks are always legal).
# ---------------------------------------------------------------------------
def _pick_row_tile(m: int, cap: int = 256) -> int:
    if m <= cap:
        return m
    for t in range(cap - (cap % 8), 7, -8):
        if m % t == 0:
            return t
    return m


# ---------------------------------------------------------------------------
# Linear: y = x @ w + b     x: (M, K), w: (K, Nout), b: (1, Nout)
# ---------------------------------------------------------------------------
def _linear_kernel(x_ref, w_ref, b_ref, o_ref):
    acc = jnp.dot(x_ref[...], w_ref[...], preferred_element_type=jnp.float32)
    o_ref[...] = (acc + b_ref[...]).astype(o_ref.dtype)


def _linear_pallas(x2d, w, b):
    M, K = x2d.shape
    K2, Nout = w.shape
    assert K == K2
    b2 = b.reshape(1, Nout).astype(jnp.float32)
    tm = _pick_row_tile(M)
    grid = (M // tm,)
    return pl.pallas_call(
        _linear_kernel,
        out_shape=jax.ShapeDtypeStruct((M, Nout), x2d.dtype),
        grid=grid,
        in_specs=[
            pl.BlockSpec((tm, K), lambda i: (i, 0)),
            pl.BlockSpec((K, Nout), lambda i: (0, 0)),
            pl.BlockSpec((1, Nout), lambda i: (0, 0)),
        ],
        out_specs=pl.BlockSpec((tm, Nout), lambda i: (i, 0)),
        compiler_params=pltpu.CompilerParams(
            dimension_semantics=("parallel",),
            vmem_limit_bytes=32 * 1024 * 1024,
        ),
    )(x2d, w, b2)


# ---------------------------------------------------------------------------
# Fused cosine-attention core: one (batch, head, q-tile) per grid step.
# ---------------------------------------------------------------------------
def _cos_attn_kernel(scale_ref, q_ref, k_ref, v_ref, o_ref):
    h = pl.program_id(1)
    q = q_ref[...][0, 0].astype(jnp.float32)   # (TQ, Dh)
    k = k_ref[...][0, 0].astype(jnp.float32)   # (N,  Dh)
    v = v_ref[...][0, 0].astype(jnp.float32)   # (N,  Dh)

    eps = 1e-12  # matches F.normalize default
    qn = q / jnp.maximum(jnp.sqrt(jnp.sum(q * q, axis=-1, keepdims=True)), eps)
    kn = k / jnp.maximum(jnp.sqrt(jnp.sum(k * k, axis=-1, keepdims=True)), eps)

    s = jnp.dot(qn, kn.T, preferred_element_type=jnp.float32) * scale_ref[h]
    s = s - jnp.max(s, axis=-1, keepdims=True)
    p = jnp.exp(s)
    p = p / jnp.sum(p, axis=-1, keepdims=True)
    # TODO(synk): attn_drop is identity here (p=0.0 default / eval mode).

    o = jnp.dot(p, v, preferred_element_type=jnp.float32)
    o_ref[...] = o.reshape(o_ref.shape).astype(o_ref.dtype)


def _cos_attention_core(q, k, v, logit_scale):
    B, H, N, Dh = q.shape
    tq = _pick_row_tile(N, cap=128)
    grid = (B, H, N // tq)
    flops = 4 * B * H * N * N * Dh                      # QK^T + PV
    bytes_accessed = (q.size + k.size + v.size + q.size) * q.dtype.itemsize
    return pl.pallas_call(
        _cos_attn_kernel,
        out_shape=jax.ShapeDtypeStruct((B, H, N, Dh), q.dtype),
        grid_spec=pltpu.PrefetchScalarGridSpec(
            num_scalar_prefetch=1,                      # per-head logit scale -> SMEM
            grid=grid,
            in_specs=[
                pl.BlockSpec((1, 1, tq, Dh), lambda b, h, i, scale: (b, h, i, 0)),
                pl.BlockSpec((1, 1, N, Dh), lambda b, h, i, scale: (b, h, 0, 0)),
                pl.BlockSpec((1, 1, N, Dh), lambda b, h, i, scale: (b, h, 0, 0)),
            ],
            out_specs=pl.BlockSpec((1, 1, tq, Dh), lambda b, h, i, scale: (b, h, i, 0)),
        ),
        compiler_params=pltpu.CompilerParams(
            dimension_semantics=("parallel", "parallel", "parallel"),
            vmem_limit_bytes=32 * 1024 * 1024,
        ),
        cost_estimate=pl.CostEstimate(
            flops=flops,
            transcendentals=B * H * N * N,
            bytes_accessed=bytes_accessed,
        ),
    )(logit_scale, q, k, v)


# ---------------------------------------------------------------------------
# Full CosAttention forward
# ---------------------------------------------------------------------------
def cos_attention_pallas(x, w_qkv, q_bias, v_bias, scale_param,
                         w_proj, b_proj, num_heads):
    """x: (B, N, C). Weights in PyTorch layout (out_features, in_features)."""
    B, N, C = x.shape
    all_head_dim = w_qkv.shape[0] // 3
    head_dim = all_head_dim // num_heads

    if q_bias is not None:
        qkv_bias = jnp.concatenate(
            [q_bias, jnp.zeros_like(v_bias), v_bias]).astype(jnp.float32)
    else:
        qkv_bias = jnp.zeros((3 * all_head_dim,), jnp.float32)

    # QKV projection (Pallas row-tiled matmul).
    qkv = _linear_pallas(x.reshape(B * N, C), w_qkv.T, qkv_bias)
    qkv = qkv.reshape(B, N, 3, num_heads, head_dim).transpose(2, 0, 3, 1, 4)
    q, k, v = qkv[0], qkv[1], qkv[2]                    # each (B, H, N, Dh)

    # Per-head logit scale: exp(clamp(scale, max=4.6052)); tiny scalar glue.
    logit_scale = jnp.exp(
        jnp.minimum(scale_param.reshape(-1), 4.6052)).astype(jnp.float32)

    # Fused cosine-attention kernel.
    attn_out = _cos_attention_core(q, k, v, logit_scale)        # (B, H, N, Dh)
    attn_out = attn_out.transpose(0, 2, 1, 3).reshape(B * N, all_head_dim)

    # Output projection (Pallas row-tiled matmul).
    y = _linear_pallas(attn_out, w_proj.T, b_proj)
    # TODO(synk): proj_drop is identity (p=0.0 default / eval mode).
    return y.reshape(B, N, C)


# ---------------------------------------------------------------------------
# Pure-JAX reference (mirrors the PyTorch forward) for correctness check
# ---------------------------------------------------------------------------
def _reference_cos_attention(x, w_qkv, q_bias, v_bias, scale_param,
                             w_proj, b_proj, num_heads):
    B, N, C = x.shape
    all_head_dim = w_qkv.shape[0] // 3
    head_dim = all_head_dim // num_heads
    if q_bias is not None:
        qkv_b = jnp.concatenate([q_bias, jnp.zeros_like(v_bias), v_bias])
        qkv = x @ w_qkv.T + qkv_b
    else:
        qkv = x @ w_qkv.T
    qkv = qkv.reshape(B, N, 3, num_heads, head_dim).transpose(2, 0, 3, 1, 4)
    q, k, v = qkv[0], qkv[1], qkv[2]
    qn = q / jnp.maximum(jnp.sqrt(jnp.sum(q * q, -1, keepdims=True)), 1e-12)
    kn = k / jnp.maximum(jnp.sqrt(jnp.sum(k * k, -1, keepdims=True)), 1e-12)
    attn = qn @ jnp.swapaxes(kn, -1, -2)
    logit_scale = jnp.exp(jnp.minimum(scale_param, 4.6052))     # (H, 1, 1)
    attn = attn * logit_scale
    attn = jax.nn.softmax(attn, axis=-1)
    out = jnp.swapaxes(attn @ v, 1, 2).reshape(B, N, all_head_dim)
    return out @ w_proj.T + b_proj


if __name__ == "__main__":
    key = jax.random.PRNGKey(0)
    kx, kw1, kbq, kbv, ks, kw2, kb2 = jax.random.split(key, 7)

    B, N, C, H = 2, 8, 32, 4
    head_dim = C // H
    all_head_dim = H * head_dim

    x = jax.random.normal(kx, (B, N, C), dtype=jnp.float32)
    w_qkv = 0.02 * jax.random.normal(kw1, (3 * all_head_dim, C), dtype=jnp.float32)
    q_bias = 0.02 * jax.random.normal(kbq, (all_head_dim,), dtype=jnp.float32)
    v_bias = 0.02 * jax.random.normal(kbv, (all_head_dim,), dtype=jnp.float32)
    scale_param = (jnp.log(10.0 * jnp.ones((H, 1, 1), dtype=jnp.float32))
                   + 0.1 * jax.random.normal(ks, (H, 1, 1), dtype=jnp.float32))
    w_proj = 0.02 * jax.random.normal(kw2, (C, all_head_dim), dtype=jnp.float32)
    b_proj = 0.02 * jax.random.normal(kb2, (C,), dtype=jnp.float32)

    y = cos_attention_pallas(x, w_qkv, q_bias, v_bias, scale_param,
                             w_proj, b_proj, num_heads=H)
    y = jax.block_until_ready(y)

    y_ref = _reference_cos_attention(x, w_qkv, q_bias, v_bias, scale_param,
                                     w_proj, b_proj, num_heads=H)
    assert y.shape == (B, N, C)
    assert jnp.allclose(y, y_ref, atol=5e-3, rtol=1e-2), (
        "mismatch vs reference: max abs err "
        f"{float(jnp.max(jnp.abs(y - y_ref)))}")

    print("KERNEL_OK")
</pallas_src>

<mosaic_0001>
module attributes {stable_mosaic.version = 11 : i64} {
  func.func @_linear_kernel(%arg0: i32, %arg1: memref<16x32xf32, #tpu.memory_space<vmem>>, %arg2: memref<32x96xf32, #tpu.memory_space<vmem>>, %arg3: memref<1x96xf32, #tpu.memory_space<vmem>>, %arg4: memref<16x96xf32, #tpu.memory_space<vmem>>) attributes {dimension_semantics = [#tpu.dimension_semantics<parallel>], iteration_bounds = array<i64: 1>, scalar_prefetch = 0 : i64, scratch_operands = 0 : i64, tpu.core_type = #tpu.core_type<tc>, window_params = [{transform_indices = @transform_0, window_bounds = array<i64: 16, 32>}, {pipeline_mode = #tpu.pipeline_mode<synchronous>, transform_indices = @transform_1, window_bounds = array<i64: 32, 96>}, {pipeline_mode = #tpu.pipeline_mode<synchronous>, transform_indices = @transform_2, window_bounds = array<i64: 1, 96>}, {transform_indices = @transform_3, window_bounds = array<i64: 16, 96>}]} {
    %c0 = arith.constant 0 : index
    %c0_0 = arith.constant 0 : index
    %0 = vector.load %arg1[%c0, %c0_0] : memref<16x32xf32, #tpu.memory_space<vmem>>, vector<16x32xf32>
    %c0_1 = arith.constant 0 : index
    %c0_2 = arith.constant 0 : index
    %1 = vector.load %arg2[%c0_1, %c0_2] : memref<32x96xf32, #tpu.memory_space<vmem>>, vector<32x96xf32>
    %cst = arith.constant dense<0.000000e+00> : vector<16x96xf32>
    %2 = tpu.matmul %0, %1, %cst {dimension_numbers = #tpu.dot_dimension_numbers<[1], [0], [0], [1], [0, 0, 1, 1], [], []>} : vector<16x32xf32>, vector<32x96xf32>, vector<16x96xf32> -> vector<16x96xf32>
    %c0_3 = arith.constant 0 : index
    %c0_4 = arith.constant 0 : index
    %3 = vector.load %arg3[%c0_3, %c0_4] : memref<1x96xf32, #tpu.memory_space<vmem>>, vector<1x96xf32>
    %4 = vector.broadcast %3 : vector<1x96xf32> to vector<16x96xf32>
    %5 = arith.addf %2, %4 : vector<16x96xf32>
    %c0_5 = arith.constant 0 : index
    %c0_6 = arith.constant 0 : index
    %6 = vector.load %arg4[%c0_5, %c0_6] : memref<16x96xf32, #tpu.memory_space<vmem>>, vector<16x96xf32>
    tpu.vector_store %arg4[%c0_5, %c0_6], %5 {strides = array<i32>} : memref<16x96xf32, #tpu.memory_space<vmem>>, vector<16x96xf32>,
    return
  }
  func.func @transform_0(%arg0: i32) -> (i32, i32) {
    %c0_i32 = arith.constant 0 : i32
    %c0_i32_0 = arith.constant 0 : i32
    return %arg0, %c0_i32 : i32, i32
  }
  func.func @transform_1(%arg0: i32) -> (i32, i32) {
    %c0_i32 = arith.constant 0 : i32
    %c0_i32_0 = arith.constant 0 : i32
    %c0_i32_1 = arith.constant 0 : i32
    return %c0_i32, %c0_i32_0 : i32, i32
  }
  func.func @transform_2(%arg0: i32) -> (i32, i32) {
    %c0_i32 = arith.constant 0 : i32
    %c0_i32_0 = arith.constant 0 : i32
    %c0_i32_1 = arith.constant 0 : i32
    return %c0_i32, %c0_i32_0 : i32, i32
  }
  func.func @transform_3(%arg0: i32) -> (i32, i32) {
    %c0_i32 = arith.constant 0 : i32
    %c0_i32_0 = arith.constant 0 : i32
    return %arg0, %c0_i32 : i32, i32
  }
}

</mosaic_0001>

<bundles_post_ra>
// kernel: tpu_custom_call.1
= control target key start
LH: loop header
LB: loop body
LE: loop exit
PB: predicated region body
PF: predicated region fallthrough
CT: control target
= control target key end

     0   :  { %8 = vsyncpa [#allocation3], 0  ;;  %s337_s0 = inlined_call_operand.hbm [shape: f32[16,32], index: 0, kind: input, shape index: {}]   ;;  %s338_s1 = inlined_call_operand.hbm [shape: f32[32,96], index: 1, kind: input, shape index: {}]   ;;  %s339_s2 = inlined_call_operand.vmem [shape: f32[1,96], index: 2, kind: input, shape index: {}]   ;;  %s340_s3 = inlined_call_operand.hbm [shape: f32[16,96], index: 3, kind: output, shape index: {}]  }
   0x1   :  { %9 = vsyncpa [#allocation6], 0 }
   0x2   :  { %10 = vsyncpa [#allocation4], 0  ;;  %s264_s12 = smov [#allocation2]   ;;  %s192_s16 = scalar_lea.hbm %s337_s0, 256 }
   0x3   :  { %s16_s13 = sshll.u32 %s264_s12, 4  ;;  %p193_p0 = scmp.ne.s32.totalorder %s337_s0, %s192_s16  ;;  %s17_s13 = int_to_ptr.vmem [resolvable:$true] %s16_s13 }
   0x4   :  { %p196_p1 = scmp.lt.u32.totalorder %s192_s16, %s337_s0 }
   0x6   :  { %p198_p2 = pnand %p196_p1, %p193_p0 }
   0x8   :  { %201 = shalt.err (!%p198_p2)
}
   0x9   :  { %s202_s21 = scalar_lea.vmem %s17_s13, 256  ;;  %p207_p4 = scmp.lt.s32.totalorder %s17_s13, %s17_s13 }
   0xa   :  { %p203_p3 = scmp.ne.s32.totalorder %s17_s13, %s202_s21  ;;  %p208_p5 = scmp.lt.s32.totalorder %s202_s21, %s202_s21 }
   0xc   :  { %p209_p6 = por %p208_p5, %p207_p4 }
   0xe   :  { %p210_p7 = pnand %p209_p6, %p203_p3 }
  0x10   :  { %213 = shalt.err (!%p210_p7)
}
  0x11   :  { %s265_s22 = smov 128   ;;  %s266_s23 = smov 8  }
  0x12   :  { %22 = dma.hbm_to_vmem [thread:$0]  %s337_s0, 256, %s17_s13, [#allocation3], %s265_s22, %s265_s22, %s266_s23  }
  0x13   :  { %s267_s26 = smov [#allocation5]   ;;  %s214_s30 = scalar_lea.hbm %s338_s1, 512 }
  0x14   :  { %s28_s27 = sshll.u32 %s267_s26, 4  ;;  %p215_p8 = scmp.ne.s32.totalorder %s338_s1, %s214_s30  ;;  %s29_s27 = int_to_ptr.vmem [resolvable:$true] %s28_s27 }
  0x15   :  { %p218_p9 = scmp.lt.u32.totalorder %s214_s30, %s338_s1 }
  0x17   :  { %p220_p10 = pnand %p218_p9, %p215_p8 }
  0x19   :  { %223 = shalt.err (!%p220_p10)
}
  0x1a   :  { %s224_s8 = scalar_lea.vmem %s29_s27, 512  ;;  %p229_p12 = scmp.lt.s32.totalorder %s29_s27, %s29_s27 }
  0x1b   :  { %p225_p11 = scmp.ne.s32.totalorder %s29_s27, %s224_s8  ;;  %p230_p13 = scmp.lt.s32.totalorder %s224_s8, %s224_s8 }
  0x1d   :  { %p231_p0 = por %p230_p13, %p229_p12 }
  0x1f   :  { %p232_p1 = pnand %p231_p0, %p225_p11 }
  0x21   :  { %235 = shalt.err (!%p232_p1)
}
  0x22   :  { %34 = dma.hbm_to_vmem [thread:$0]  %s338_s1, 512, %s29_s27, [#allocation6], %s265_s22, %s265_s22, %s266_s23  }
  0x23   :  { %258 = dma.done.wait [#allocation3], 256  }
  0x24   :  { %259 = vsyncadd [#allocation3], 4294967040 }
  0x25   :  { %260 = dma.done.wait [#allocation6], 512  }
  0x26   :  { %261 = vsyncadd [#allocation6], 4294966784  ;;  %vm56_vm0 = vcmask 261120   ;;  %v45_v0 = vld [vmem:[#allocation5] sm:$0xff]  ;;  %v46_v1 = vld [vmem:[#allocation5 + $0x8] sm:$0xff]  ;;  %s268_s11 = smov [#allocation7]  }
  0x27   :  { %v47_v2 = vld [vmem:[#allocation5 + $0x10] sm:$0xff]  ;;  %v179_v3 = vpack.c.bf16 %v46_v1, %v45_v0  ;;  %v48_v4 = vld [vmem:[#allocation5 + $0x18] sm:$0xff]  ;;  %s146_s12 = sshll.u32 %s268_s11, 4  ;;  %vm138_vm1 = vcmask 785408   ;;  %s147_s12 = int_to_ptr.vmem [resolvable:$true] %s146_s12 }
  0x28   :  { %v43_v5 = vld [vmem:[#allocation2] sm:$0xff]  ;;  %v183_v6 = vpack.c.bf16 %v48_v4, %v47_v2  ;;  %v44_v7 = vld [vmem:[#allocation2 + $0x8] sm:$0xff]  ;;  %s236_s13 = scalar_lea.vmem %s147_s12, 256  ;;  %p241_p3 = scmp.lt.s32.totalorder %s147_s12, %s147_s12 }
  0x29   :  { %176 = vmatprep.mubr.msk.f32.mxu0 %vm56_vm0, %v43_v5  ;;  %180 = vmatprep.subr.bf16.mxu0 %v179_v3  ;;  %v159_v8 = vld [vmem:[%s339_s2] ss:$0 sm:$0xff]  ;;  %p237_p2 = scmp.ne.s32.totalorder %s147_s12, %s236_s13  ;;  %p242_p4 = scmp.lt.s32.totalorder %s236_s13, %s236_s13 }
  0x2a   :  { %182 = vmatpush3.bf16.msra.mxu0 %v179_v3 }
  0x2b   :  { %184 = vmatprep.subr.bf16.mxu0 %v183_v6  ;;  %p243_p5 = por %p242_p4, %p241_p3 }
  0x2d   :  { %p244_p6 = pnand %p243_p5, %p237_p2 }
  0x2e   :  { %186 = vmatpush3.bf16.msra.mxu0 %v183_v6 }
  0x31   :  { %177 = vmatmul.mubr.msk.f32.vlgmr.msra.gmra.mrb[0].mxu0 %vm56_vm0, %v44_v7 }
 0x104   :  { %v178_v9 = vpop.f32.mrb[0].mxu0 }
 0x105   :  { %v135_v10 = vadd.f32 %v178_v9, %v159_v8  ;;  %v129_v11 = vpop.f32.mrb[1].mxu0 }
 0x106   :  { %v130_v12 = vadd.f32 %v159_v8, %v129_v11 }
 0x107   :  { %140 = vst.msk [vmem:[#allocation7 + $0x8] sm:$0xff] %vm138_vm1, %v135_v10 }
 0x108   :  { %139 = vst.msk [vmem:[#allocation7] sm:$0xff] %vm138_vm1, %v130_v12 }
 0x109   :  { %247 = shalt.err (!%p244_p6)
}
 0x10a   :  { %s248_s2 = scalar_lea.hbm %s340_s3, 256 }
 0x10b   :  { %p249_p7 = scmp.ne.s32.totalorder %s340_s3, %s248_s2  ;;  %p252_p8 = scmp.lt.u32.totalorder %s248_s2, %s340_s3 }
 0x10d   :  { %p254_p9 = pnand %p252_p8, %p249_p7 }
 0x10f   :  { %257 = shalt.err (!%p254_p9)
}
 0x110   :  { %152 = dma.vmem_to_hbm [thread:$0]  %s147_s12, 256, %s340_s3, [#allocation4], %s265_s22, %s265_s22, %s266_s23  }
 0x111   :  { %262 = dma.done.wait [#allocation4], 256  }
 0x112   :  { %263 = vsyncadd [#allocation4], 4294967040 }
 0x113   :  { %156 = vsyncpa [#allocation3], 1 }
 0x114   :  { %157 = vsyncpa [#allocation6], 1 }
 0x115   :  { %158 = vsyncpa [#allocation4], 1 }

</bundles_post_ra>
